<compile_context>
chip_gen: v7x
topology: tpu7x:2x2x1
jax: 0.10.0
libtpu: 0.0.40
codegen_flags: <defaults>
</compile_context>

<pallas_src>
import functools

import jax
import jax.numpy as jnp
from jax.experimental import pallas as pl
from jax.experimental.pallas import tpu as pltpu


def attention_kernel(s_ref, enc_ref, w_s_ref, w_e_ref, v_ref, out_ref):
    # s_ref  : (TB, dec_hid)            bf16
    # enc_ref: (TB, L, 2*enc_hid)       bf16
    # w_s_ref: (dec_hid, dec_hid)       bf16   (resident)
    # w_e_ref: (2*enc_hid, dec_hid)     bf16   (resident)
    # v_ref  : (1, dec_hid)             f32    (resident)
    # out_ref: (TB, L)                  f32
    tb, src_len, enc2 = enc_ref.shape
    dec_hid = s_ref.shape[-1]

    # One big MXU matmul over all TB*L encoder rows of this block.
    enc_flat = enc_ref[...].reshape(tb * src_len, enc2)               # (TB*L, 2E)
    proj_e = jnp.dot(enc_flat, w_e_ref[...],
                     preferred_element_type=jnp.float32)              # (TB*L, D) f32
    proj_e = proj_e.reshape(tb, src_len, dec_hid)                     # (TB, L, D)

    # concat(s, enc) @ W^T == s @ W_s + enc @ W_e  (s broadcast over src_len)
    proj_s = jnp.dot(s_ref[...], w_s_ref[...],
                     preferred_element_type=jnp.float32)              # (TB, D) f32

    energy = jnp.tanh(proj_e + proj_s[:, None, :])                    # (TB, L, D) f32

    # scores[b, l] = sum_d energy[b, l, d] * v[d]  -> multiply + lane reduce,
    # result lands directly as (TB, L) (no N=1 matmul, no sublane->lane reshape).
    v_row = v_ref[...].astype(jnp.float32)                            # (1, D)
    scores = jnp.sum(energy * v_row, axis=-1)                         # (TB, L)

    # Numerically stable softmax over src_len (== dim=1 of the torch output).
    m = jnp.max(scores, axis=-1, keepdims=True)
    e = jnp.exp(scores - m)
    denom = jnp.sum(e, axis=-1, keepdims=True)
    out_ref[...] = (e * pl.reciprocal(denom, approx=True)).astype(out_ref.dtype)


def attention_forward(s, enc_output, w_attn, w_v, *, block_b=None,
                      compute_dtype=jnp.bfloat16):
    """
    s          : [B, dec_hid]
    enc_output : [B, src_len, 2*enc_hid]
    w_attn     : [dec_hid, 2*enc_hid + dec_hid]   (torch nn.Linear weight, bias=False)
    w_v        : [1, dec_hid]                     (torch nn.Linear weight, bias=False)
    returns    : [B, src_len]  softmax attention weights (f32)
    """
    B, L, enc2 = enc_output.shape
    dec_hid = s.shape[1]

    # torch Linear weight is (out, in); concat order in forward is (s, enc_output),
    # so columns [:dec_hid] act on s and columns [dec_hid:] act on enc_output.
    w_s = jnp.transpose(w_attn[:, :dec_hid]).astype(compute_dtype)    # (D, D)
    w_e = jnp.transpose(w_attn[:, dec_hid:]).astype(compute_dtype)    # (2E, D)
    v_row = w_v.astype(jnp.float32)                                   # (1, D)

    # bf16 MXU operands (f32 accumulation inside the kernel).
    s_c = s.astype(compute_dtype)
    enc_c = enc_output.astype(compute_dtype)

    # Batch TB rows per grid step so per-step overhead and tiny DMAs do not
    # dominate. Cap at 128 rows; pad B to a multiple of TB when needed.
    if block_b is None:
        block_b = min(B, 128)
    block_b = max(1, min(block_b, B))
    num_blocks = pl.cdiv(B, block_b)
    b_pad = num_blocks * block_b
    if b_pad != B:
        s_c = jnp.pad(s_c, ((0, b_pad - B), (0, 0)))
        enc_c = jnp.pad(enc_c, ((0, b_pad - B), (0, 0), (0, 0)))

    itemsize_c = jnp.dtype(compute_dtype).itemsize
    cost = pl.CostEstimate(
        flops=(2 * b_pad * L * enc2 * dec_hid          # enc @ w_e
               + 2 * b_pad * dec_hid * dec_hid          # s @ w_s
               + 2 * b_pad * L * dec_hid),              # v contraction
        transcendentals=b_pad * L * dec_hid + b_pad * L,  # tanh + exp
        bytes_accessed=(b_pad * dec_hid * itemsize_c
                        + b_pad * L * enc2 * itemsize_c
                        + (dec_hid + enc2) * dec_hid * itemsize_c
                        + dec_hid * 4
                        + b_pad * L * 4),
    )

    grid_spec = pltpu.PrefetchScalarGridSpec(
        num_scalar_prefetch=0,
        grid=(num_blocks,),
        in_specs=[
            pl.BlockSpec((block_b, dec_hid), lambda b: (b, 0)),
            pl.BlockSpec((block_b, L, enc2), lambda b: (b, 0, 0)),
            pl.BlockSpec((dec_hid, dec_hid), lambda b: (0, 0)),   # resident
            pl.BlockSpec((enc2, dec_hid), lambda b: (0, 0)),      # resident
            pl.BlockSpec((1, dec_hid), lambda b: (0, 0)),         # resident
        ],
        # Output slab is (TB, L); L stays the true src_len. TODO(synk): for very
        # small L at scale, pad/transpose so a >=128-wide dim is last for fully
        # lane-dense stores.
        out_specs=pl.BlockSpec((block_b, L), lambda b: (b, 0)),
    )

    out = pl.pallas_call(
        attention_kernel,
        out_shape=jax.ShapeDtypeStruct((b_pad, L), jnp.float32),
        grid_spec=grid_spec,
        compiler_params=pltpu.CompilerParams(
            dimension_semantics=("parallel",)),
        cost_estimate=cost,
    )(s_c, enc_c, w_s, w_e, v_row)

    return out[:B] if b_pad != B else out


def attention_reference(s, enc_output, w_attn, w_v):
    B, L, _ = enc_output.shape
    s_rep = jnp.broadcast_to(s[:, None, :], (B, L, s.shape[1]))
    cat = jnp.concatenate([s_rep, enc_output], axis=2)
    energy = jnp.tanh(jnp.einsum('bli,hi->blh', cat, w_attn))
    attn = jnp.einsum('blh,oh->blo', energy, w_v)[..., 0]
    return jax.nn.softmax(attn, axis=1)


if __name__ == "__main__":
    # Small shapes consistent with the module
    batch = 2
    src_len = 8
    enc_hid_dim = 16   # enc_output feature dim = 2 * enc_hid_dim = 32
    dec_hid_dim = 32

    key = jax.random.PRNGKey(0)
    k1, k2, k3, k4 = jax.random.split(key, 4)

    s = jax.random.normal(k1, (batch, dec_hid_dim), dtype=jnp.float32)
    enc_output = jax.random.normal(
        k2, (batch, src_len, 2 * enc_hid_dim), dtype=jnp.float32)

    # Deterministic parameter init (torch nn.Linear weight shapes, bias=False)
    in_dim = 2 * enc_hid_dim + dec_hid_dim
    w_attn = jax.random.normal(k3, (dec_hid_dim, in_dim), dtype=jnp.float32) * 0.1
    w_v = jax.random.normal(k4, (1, dec_hid_dim), dtype=jnp.float32) * 0.1

    out = attention_forward(s, enc_output, w_attn, w_v)
    out = jax.block_until_ready(out)

    # Reference on the same bf16-rounded operands the kernel consumes (tight),
    # plus the full-f32 reference (relaxed).
    bf = lambda x: x.astype(jnp.bfloat16).astype(jnp.float32)
    ref_bf16 = attention_reference(bf(s), bf(enc_output), bf(w_attn), w_v)
    ref_f32 = attention_reference(s, enc_output, w_attn, w_v)

    assert out.shape == (batch, src_len)
    assert jnp.allclose(out, ref_bf16, atol=5e-3, rtol=5e-3), \
        "mismatch vs bf16-rounded reference"
    assert jnp.allclose(out, ref_f32, atol=2e-2, rtol=2e-2), \
        "mismatch vs f32 reference"
    assert jnp.allclose(jnp.sum(out, axis=1), 1.0, atol=5e-3)

    print("KERNEL_OK")
</pallas_src>

<mosaic_0001>
module attributes {stable_mosaic.version = 11 : i64} {
  func.func @attention_kernel(%arg0: i32, %arg1: memref<2x32xbf16, #tpu.memory_space<vmem>>, %arg2: memref<2x8x32xbf16, #tpu.memory_space<vmem>>, %arg3: memref<32x32xbf16, #tpu.memory_space<vmem>>, %arg4: memref<32x32xbf16, #tpu.memory_space<vmem>>, %arg5: memref<1x32xf32, #tpu.memory_space<vmem>>, %arg6: memref<2x8xf32, #tpu.memory_space<vmem>>) attributes {dimension_semantics = [#tpu.dimension_semantics<parallel>], iteration_bounds = array<i64: 1>, scalar_prefetch = 0 : i64, scratch_operands = 0 : i64, tpu.core_type = #tpu.core_type<tc>, window_params = [{transform_indices = @transform_0, window_bounds = array<i64: 2, 32>}, {transform_indices = @transform_1, window_bounds = array<i64: 2, 8, 32>}, {pipeline_mode = #tpu.pipeline_mode<synchronous>, transform_indices = @transform_2, window_bounds = array<i64: 32, 32>}, {pipeline_mode = #tpu.pipeline_mode<synchronous>, transform_indices = @transform_3, window_bounds = array<i64: 32, 32>}, {pipeline_mode = #tpu.pipeline_mode<synchronous>, transform_indices = @transform_4, window_bounds = array<i64: 1, 32>}, {transform_indices = @transform_5, window_bounds = array<i64: 2, 8>}]} {
    %c0 = arith.constant 0 : index
    %c0_0 = arith.constant 0 : index
    %c0_1 = arith.constant 0 : index
    %0 = vector.load %arg2[%c0, %c0_0, %c0_1] : memref<2x8x32xbf16, #tpu.memory_space<vmem>>, vector<2x8x32xbf16>
    %1 = vector.shape_cast %0 : vector<2x8x32xbf16> to vector<16x32xbf16>
    %c0_2 = arith.constant 0 : index
    %c0_3 = arith.constant 0 : index
    %2 = vector.load %arg4[%c0_2, %c0_3] : memref<32x32xbf16, #tpu.memory_space<vmem>>, vector<32x32xbf16>
    %cst = arith.constant dense<0.000000e+00> : vector<16x32xf32>
    %3 = tpu.matmul %1, %2, %cst {dimension_numbers = #tpu.dot_dimension_numbers<[1], [0], [0], [1], [0, 0, 1, 1], [], []>} : vector<16x32xbf16>, vector<32x32xbf16>, vector<16x32xf32> -> vector<16x32xf32>
    %4 = vector.shape_cast %3 : vector<16x32xf32> to vector<2x8x32xf32>
    %c0_4 = arith.constant 0 : index
    %c0_5 = arith.constant 0 : index
    %5 = vector.load %arg1[%c0_4, %c0_5] : memref<2x32xbf16, #tpu.memory_space<vmem>>, vector<2x32xbf16>
    %c0_6 = arith.constant 0 : index
    %c0_7 = arith.constant 0 : index
    %6 = vector.load %arg3[%c0_6, %c0_7] : memref<32x32xbf16, #tpu.memory_space<vmem>>, vector<32x32xbf16>
    %cst_8 = arith.constant dense<0.000000e+00> : vector<2x32xf32>
    %7 = tpu.matmul %5, %6, %cst_8 {dimension_numbers = #tpu.dot_dimension_numbers<[1], [0], [0], [1], [0, 0, 1, 1], [], []>} : vector<2x32xbf16>, vector<32x32xbf16>, vector<2x32xf32> -> vector<2x32xf32>
    %8 = vector.shape_cast %7 : vector<2x32xf32> to vector<2x1x32xf32>
    %9 = vector.broadcast %8 : vector<2x1x32xf32> to vector<2x8x32xf32>
    %10 = arith.addf %4, %9 : vector<2x8x32xf32>
    %11 = math.tanh %10 : vector<2x8x32xf32>
    %c0_9 = arith.constant 0 : index
    %c0_10 = arith.constant 0 : index
    %12 = vector.load %arg5[%c0_9, %c0_10] : memref<1x32xf32, #tpu.memory_space<vmem>>, vector<1x32xf32>
    %13 = vector.shape_cast %12 : vector<1x32xf32> to vector<1x1x32xf32>
    %14 = vector.broadcast %13 : vector<1x1x32xf32> to vector<2x8x32xf32>
    %15 = arith.mulf %11, %14 : vector<2x8x32xf32>
    %cst_11 = arith.constant dense<0.000000e+00> : vector<2x8xf32>
    %16 = vector.multi_reduction <add>, %15, %cst_11 [2] : vector<2x8x32xf32> to vector<2x8xf32>
    %cst_12 = arith.constant dense<0xFF800000> : vector<2xf32>
    %17 = vector.multi_reduction <maximumf>, %16, %cst_12 [1] : vector<2x8xf32> to vector<2xf32>
    %18 = vector.shape_cast %17 : vector<2xf32> to vector<2x1xf32>
    %19 = vector.broadcast %18 : vector<2x1xf32> to vector<2x8xf32>
    %20 = arith.subf %16, %19 : vector<2x8xf32>
    %21 = math.exp %20 : vector<2x8xf32>
    %cst_13 = arith.constant dense<0.000000e+00> : vector<2xf32>
    %22 = vector.multi_reduction <add>, %21, %cst_13 [1] : vector<2x8xf32> to vector<2xf32>
    %23 = vector.shape_cast %22 : vector<2xf32> to vector<2x1xf32>
    %24 = tpu.reciprocal %23 {approx = true} : vector<2x1xf32> -> vector<2x1xf32>
    %25 = vector.broadcast %24 : vector<2x1xf32> to vector<2x8xf32>
    %26 = arith.mulf %21, %25 : vector<2x8xf32>
    %c0_14 = arith.constant 0 : index
    %c0_15 = arith.constant 0 : index
    %27 = vector.load %arg6[%c0_14, %c0_15] : memref<2x8xf32, #tpu.memory_space<vmem>>, vector<2x8xf32>
    tpu.vector_store %arg6[%c0_14, %c0_15], %26 {strides = array<i32>} : memref<2x8xf32, #tpu.memory_space<vmem>>, vector<2x8xf32>,
    return
  }
  func.func @transform_0(%arg0: i32) -> (i32, i32) {
    %c0_i32 = arith.constant 0 : i32
    %c0_i32_0 = arith.constant 0 : i32
    return %arg0, %c0_i32 : i32, i32
  }
  func.func @transform_1(%arg0: i32) -> (i32, i32, i32) {
    %c0_i32 = arith.constant 0 : i32
    %c0_i32_0 = arith.constant 0 : i32
    %c0_i32_1 = arith.constant 0 : i32
    return %arg0, %c0_i32, %c0_i32_0 : i32, i32, i32
  }
  func.func @transform_2(%arg0: i32) -> (i32, i32) {
    %c0_i32 = arith.constant 0 : i32
    %c0_i32_0 = arith.constant 0 : i32
    %c0_i32_1 = arith.constant 0 : i32
    return %c0_i32, %c0_i32_0 : i32, i32
  }
  func.func @transform_3(%arg0: i32) -> (i32, i32) {
    %c0_i32 = arith.constant 0 : i32
    %c0_i32_0 = arith.constant 0 : i32
    %c0_i32_1 = arith.constant 0 : i32
    return %c0_i32, %c0_i32_0 : i32, i32
  }
  func.func @transform_4(%arg0: i32) -> (i32, i32) {
    %c0_i32 = arith.constant 0 : i32
    %c0_i32_0 = arith.constant 0 : i32
    %c0_i32_1 = arith.constant 0 : i32
    return %c0_i32, %c0_i32_0 : i32, i32
  }
  func.func @transform_5(%arg0: i32) -> (i32, i32) {
    %c0_i32 = arith.constant 0 : i32
    %c0_i32_0 = arith.constant 0 : i32
    return %arg0, %c0_i32 : i32, i32
  }
}

</mosaic_0001>

<bundles_post_ra>
// kernel: tpu_custom_call.1
= control target key start
LH: loop header
LB: loop body
LE: loop exit
PB: predicated region body
PF: predicated region fallthrough
CT: control target
= control target key end

     0   :  { %10 = vsyncpa [#allocation3], 0  ;;  %s673_s0 = inlined_call_operand.hbm [shape: bf16[2,32], index: 0, kind: input, shape index: {}]   ;;  %s674_s1 = inlined_call_operand.hbm [shape: bf16[2,8,32], index: 1, kind: input, shape index: {}]   ;;  %s675_s2 = inlined_call_operand.hbm [shape: bf16[32,32], index: 2, kind: input, shape index: {}]   ;;  %s676_s3 = inlined_call_operand.hbm [shape: bf16[32,32], index: 3, kind: input, shape index: {}]   ;;  %s677_s4 = inlined_call_operand.vmem [shape: f32[1,32], index: 4, kind: input, shape index: {}]   ;;  %s678_s5 = inlined_call_operand.hbm [shape: f32[2,8], index: 5, kind: output, shape index: {}]  }
   0x1   :  { %11 = vsyncpa [#allocation6], 0 }
   0x2   :  { %12 = vsyncpa [#allocation9], 0 }
   0x3   :  { %13 = vsyncpa [#allocation4], 0  ;;  %s538_s18 = smov [#allocation5]   ;;  %s420_s22 = scalar_lea.hbm %s674_s1, 128 }
   0x4   :  { %s29_s19 = sshll.u32 %s538_s18, 4  ;;  %p421_p0 = scmp.ne.s32.totalorder %s674_s1, %s420_s22  ;;  %s30_s19 = int_to_ptr.vmem [resolvable:$true] %s29_s19 }
   0x5   :  { %p424_p1 = scmp.lt.u32.totalorder %s420_s22, %s674_s1 }
   0x7   :  { %p426_p2 = pnand %p424_p1, %p421_p0 }
   0x9   :  { %429 = shalt.err (!%p426_p2)
}
   0xa   :  { %s430_s27 = scalar_lea.vmem %s30_s19, 128  ;;  %p435_p4 = scmp.lt.s32.totalorder %s30_s19, %s30_s19 }
   0xb   :  { %p431_p3 = scmp.ne.s32.totalorder %s30_s19, %s430_s27  ;;  %p436_p5 = scmp.lt.s32.totalorder %s430_s27, %s430_s27 }
   0xd   :  { %p437_p6 = por %p436_p5, %p435_p4 }
   0xf   :  { %p438_p7 = pnand %p437_p6, %p431_p3 }
  0x11   :  { %441 = shalt.err (!%p438_p7)
}
  0x12   :  { %s539_s28 = smov 64   ;;  %s540_s29 = smov 4  }
  0x13   :  { %35 = dma.hbm_to_vmem [thread:$0]  %s674_s1, 128, %s30_s19, [#allocation6], %s539_s28, %s539_s28, %s540_s29  }
  0x14   :  { %s541_s7 = smov [#allocation2]   ;;  %s542_s9 = smov [#allocation7]  }
  0x15   :  { %s20_s8 = sshll.u32 %s541_s7, 4  ;;  %s41_s10 = sshll.u32 %s542_s9, 4  ;;  %s21_s8 = int_to_ptr.vmem [resolvable:$true] %s20_s8  ;;  %s42_s10 = int_to_ptr.vmem [resolvable:$true] %s41_s10 }
  0x16   :  { %s442_s13 = scalar_lea.hbm %s673_s0, 16 }
  0x17   :  { %p443_p8 = scmp.ne.s32.totalorder %s673_s0, %s442_s13  ;;  %p446_p9 = scmp.lt.u32.totalorder %s442_s13, %s673_s0 }
  0x19   :  { %p448_p10 = pnand %p446_p9, %p443_p8 }
  0x1b   :  { %451 = shalt.err (!%p448_p10)
}
  0x1c   :  { %s452_s1 = scalar_lea.vmem %s21_s8, 16  ;;  %s456_s18 = scalar_lea.vmem %s21_s8, 32 }
  0x1d   :  { %p453_p11 = scmp.ne.s32.totalorder %s21_s8, %s452_s1  ;;  %p457_p12 = scmp.lt.s32.totalorder %s21_s8, %s21_s8 }
  0x1e   :  { %p458_p13 = scmp.lt.s32.totalorder %s456_s18, %s452_s1 }
  0x20   :  { %p459_p0 = por %p458_p13, %p457_p12 }
  0x22   :  { %p460_p1 = pnand %p459_p0, %p453_p11 }
  0x24   :  { %463 = shalt.err (!%p460_p1)
}
  0x25   :  { %23 = dma.hbm_to_vmem [thread:$0]  %s673_s0, 16, %s21_s8, [#allocation3]  }
  0x26   :  { %s464_s23 = scalar_lea.hbm %s675_s2, 256 }
  0x27   :  { %p465_p2 = scmp.ne.s32.totalorder %s675_s2, %s464_s23  ;;  %p468_p3 = scmp.lt.u32.totalorder %s464_s23, %s675_s2 }
  0x29   :  { %p470_p4 = pnand %p468_p3, %p465_p2 }
  0x2b   :  { %473 = shalt.err (!%p470_p4)
}
  0x2c   :  { %s474_s30 = scalar_lea.vmem %s42_s10, 256  ;;  %p479_p6 = scmp.lt.s32.totalorder %s42_s10, %s42_s10 }
  0x2d   :  { %p475_p5 = scmp.ne.s32.totalorder %s42_s10, %s474_s30  ;;  %p480_p7 = scmp.lt.s32.totalorder %s474_s30, %s474_s30 }
  0x2f   :  { %p481_p8 = por %p480_p7, %p479_p6 }
  0x31   :  { %p482_p9 = pnand %p481_p8, %p475_p5 }
  0x33   :  { %485 = shalt.err (!%p482_p9)
}
  0x34   :  { %47 = dma.hbm_to_vmem [thread:$0]  %s675_s2, 256, %s42_s10, [#allocation6], %s539_s28, %s539_s28, %s540_s29  }
  0x35   :  { %s543_s7 = smov [#allocation8]   ;;  %s486_s12 = scalar_lea.hbm %s676_s3, 256 }
  0x36   :  { %s53_s8 = sshll.u32 %s543_s7, 4  ;;  %p487_p10 = scmp.ne.s32.totalorder %s676_s3, %s486_s12  ;;  %s54_s8 = int_to_ptr.vmem [resolvable:$true] %s53_s8 }
  0x37   :  { %p490_p11 = scmp.lt.u32.totalorder %s486_s12, %s676_s3 }
  0x39   :  { %p492_p12 = pnand %p490_p11, %p487_p10 }
  0x3b   :  { %495 = shalt.err (!%p492_p12)
}
  0x3c   :  { %s496_s17 = scalar_lea.vmem %s54_s8, 256  ;;  %p501_p0 = scmp.lt.s32.totalorder %s54_s8, %s54_s8 }
  0x3d   :  { %p497_p13 = scmp.ne.s32.totalorder %s54_s8, %s496_s17  ;;  %p502_p1 = scmp.lt.s32.totalorder %s496_s17, %s496_s17 }
  0x3f   :  { %p503_p2 = por %p502_p1, %p501_p0 }
  0x41   :  { %p504_p3 = pnand %p503_p2, %p497_p13 }
  0x43   :  { %507 = shalt.err (!%p504_p3)
}
  0x44   :  { %59 = dma.hbm_to_vmem [thread:$0]  %s676_s3, 256, %s54_s8, [#allocation9], %s539_s28, %s539_s28, %s540_s29  }
  0x45   :  { %530 = dma.done.wait [#allocation3], 16  }
  0x46   :  { %531 = vsyncadd [#allocation3], 4294967280 }
  0x47   :  { %532 = dma.done.wait [#allocation6], 384  }
  0x48   :  { %533 = vsyncadd [#allocation6], 4294966912 }
  0x49   :  { %534 = dma.done.wait [#allocation9], 256  }
  0x4a   :  { %535 = vsyncadd [#allocation9], 4294967040  ;;  %v544_v0 = vmov 0.0   ;;  %vm545_vm0 = vmmov 0   ;;  %v405_v1 = vld [vmem:[#allocation7] sm:$0xff]   ;;  %v406_v2 = vld [vmem:[#allocation8] sm:$0xff]   ;;  %v207_v9 = vlaneseq }
  0x4b   :  { %384 = vmatprep.subr.bf16.mxu1 %v544_v0  ;;  %376 = vmatprep.subr.bf16.mxu0 %v544_v0  ;;  %v407_v3 = vld [vmem:[#allocation7 + $0x8] sm:$0xff]   ;;  %v408_v4 = vld [vmem:[#allocation8 + $0x8] sm:$0xff]   ;;  %vm98_vm1 = vcmask 261120   ;;  %v143_v5 = vld [vmem:[#allocation2] sm:$0x1]  ;;  %vm267_vm2 = vcmask 1041409  }
  0x4c   :  { %388 = vmatprep.mubr.msk.bf16.mxu1 %vm545_vm0, %v544_v0  ;;  %380 = vmatprep.mubr.msk.bf16.mxu0 %vm545_vm0, %v544_v0  ;;  %v409_v6 = vld [vmem:[#allocation5] sm:$0xff]   ;;  %v546_v7 = vmov 1966171168   ;;  %v638_v11 = vshrl.u32 %v207_v9, 7  ;;  %v369_v30 = vld [vmem:[%s677_s4] ss:$0 sm:$0xff] }
  0x4d   :  { %385 = vmatpush3.bf16.msra.mxu1 %v405_v1  ;;  %377 = vmatpush3.bf16.msra.mxu0 %v406_v2  ;;  %v205_v8 = vunpack.c.l.s4 %v546_v7  ;;  %v258_v37 = vand.u32 127, %v207_v9  ;;  %vm270_vm3 = vcmask 58368   ;;  %v547_v45 = vmov 0   ;;  %s548_s4 = smov [#allocation10]  }
  0x4e   :  { %386 = vmatprep.subr.bf16.mxu1 %v544_v0  ;;  %378 = vmatprep.subr.bf16.mxu0 %v544_v0  ;;  %v642_v17 = vsub.s32 0, %v638_v11  ;;  %v281_v46 = vsub.s32 1, %v638_v11  ;;  %s351_s29 = sshll.u32 %s548_s4, 4  ;;  %s352_s29 = int_to_ptr.vmem [resolvable:$true] %s351_s29 }
  0x4f   :  { %v206_v10 = vunpack.c.0.s8 %v205_v8  ;;  %v261_v39 = vsub.s32 %v258_v37, %v638_v11  ;;  %404 = vset.pattern.permute.xlu0 %v547_v45  ;;  %403 = vset.pattern.permute.xlu1 %v547_v45  ;;  %s508_s1 = scalar_lea.vmem %s352_s29, 32  ;;  %p513_p5 = scmp.lt.s32.totalorder %s352_s29, %s352_s29 }
  0x50   :  { %p509_p4 = scmp.ne.s32.totalorder %s352_s29, %s508_s1  ;;  %p514_p6 = scmp.lt.s32.totalorder %s508_s1, %s508_s1 }
  0x51   :  { %387 = vmatpush3.bf16.msra.mxu1 %v407_v3  ;;  %379 = vmatpush3.bf16.msra.mxu0 %v408_v4  ;;  %v209_v12 = vsub.s32 %v206_v10, %v638_v11 }
  0x52   :  { %p515_p7 = por %p514_p6, %p513_p5 }
  0x54   :  { %389 = vmatmul.mubr.msk.bf16.vlgmr.msra.gmra.mrb[0].mxu1 %vm98_vm1, %v143_v5  ;;  %381 = vmatmul.mubr.msk.bf16.vlgmr.msra.gmra.mrb[0].mxu0 %vm98_vm1, %v409_v6  ;;  %p516_p8 = pnand %p515_p7, %p509_p4 }
 0x127   :  { %v197_v13 = vpop.f32.mrb[0].mxu1  ;;  %v136_v16 = vpop.f32.mrb[0].mxu0 }
 0x128   :  { %v210_v14 = vrot.slane %v197_v13, %v209_v12  ;;  %v390_v15 = vpop.f32.mrb[1].mxu1  ;;  %v382_v19 = vpop.f32.mrb[1].mxu0 }
 0x129   :  { %v200_v18 = vpop.f32.mrb[2].mxu1  ;;  %v139_v23 = vpop.f32.mrb[2].mxu0 }
 0x12a   :  { %v211_v20 = vcombine.high %v210_v14, %v210_v14  ;;  %v218_v21 = vrot.slane %v210_v14, %v209_v12  ;;  %v391_v22 = vpop.f32.mrb[3].mxu1  ;;  %v383_v24 = vpop.f32.mrb[3].mxu0 }
 0x12c   :  { %v229_v25 = vrot.slane %v218_v21, %v642_v17  ;;  %v225_v26 = vrot.slane %v211_v20, %v209_v12 }
 0x12e   :  { %v236_v27 = vadd.f32 %v229_v25, %v136_v16  ;;  %v233_v28 = vrot.slane %v225_v26, %v642_v17 }
 0x130   :  { %410 = vtanh.f32 %v236_v27  ;;  %v237_v29 = vadd.f32 %v233_v28, %v139_v23 }
 0x132   :  { %412 = vtanh.f32 %v237_v29 }
 0x13a   :  { %v411_v31 = vpop.eup %410 }
 0x13b   :  { %v247_v32 = vmul.f32 %v411_v31, %v369_v30 }
 0x13c   :  { %v413_v33 = vpop.eup %412 }
 0x13d   :  { %v249_v34 = vsel %vm98_vm1, %v247_v32, 0.0  ;;  %v248_v35 = vmul.f32 %v413_v33, %v369_v30 }
 0x13e   :  { %250 = vadd.xlane.f32.xlu0 %v249_v34 }
 0x13f   :  { %v252_v36 = vsel %vm98_vm1, %v248_v35, 0.0 }
 0x142   :  { %253 = vadd.xlane.f32.xlu0 %v252_v36 }
 0x1cb   :  { %v251_v38 = vpop.xlane.xlu0 %250 }
 0x1cc   :  { %v262_v41 = vrot.slane %v251_v38, %v261_v39 }
 0x1cf   :  { %v254_v40 = vpop.xlane.xlu0 %253 }
 0x1d0   :  { %v266_v42 = vrot.slane %v254_v40, %v261_v39 }
 0x1d2   :  { %v268_v43 = vsel %vm267_vm2, %v266_v42, %v262_v41 }
 0x1d3   :  { %v271_v44 = vsel %vm270_vm3, %v268_v43, -inf }
 0x1d4   :  { %272 = vmax.xlane.f32.xlu1 %v271_v44 }
 0x261   :  { %v273_v47 = vpop.xlane.xlu1 %272 }
 0x262   :  { %v278_v48 = vrot.slane %v273_v47, %v642_v17  ;;  %v282_v49 = vrot.slane %v273_v47, %v281_v46 }
 0x264   :  { %v285_v50 = vsub.f32 %v251_v38, %v278_v48  ;;  %v286_v51 = vsub.f32 %v254_v40, %v282_v49 }
 0x266   :  { %v287_v52 = vmul.f32 1.442695, %v285_v50  ;;  %v289_v53 = vmul.f32 1.442695, %v286_v51 }
 0x268   :  { %414 = vpow2.f32 %v287_v52 }
 0x269   :  { %416 = vpow2.f32 %v289_v53 }
 0x272   :  { %v415_v54 = vpop.eup %414 }
 0x273   :  { %v417_v55 = vpop.eup %416  ;;  %294 = vperm.xlu1 %403, %v415_v54  }
 0x274   :  { %297 = vperm.xlu0 %404, %v417_v55  }
 0x2f2   :  { %v295_v56 = vpop.permute.xlu1 %294 }
 0x2f3   :  { %v298_v57 = vpop.permute.xlu0 %297  ;;  %v302_v58 = vrot.slane %v295_v56, %v261_v39 }
 0x2f4   :  { %v306_v59 = vrot.slane %v298_v57, %v261_v39 }
 0x2f6   :  { %v307_v60 = vsel %vm267_vm2, %v306_v59, %v302_v58 }
 0x2f7   :  { %v309_v61 = vsel %vm270_vm3, %v307_v60, 0.0 }
 0x2f8   :  { %310 = vadd.xlane.f32.xlu1 %v309_v61 }
 0x385   :  { %v311_v62 = vpop.xlane.xlu1 %310 }
 0x386   :  { %418 = vrcp.f32 %v311_v62 }
 0x390   :  { %v419_v63 = vpop.eup %418 }
 0x391   :  { %v317_v0 = vrot.slane %v419_v63, %v642_v17  ;;  %v321_v2 = vrot.slane %v419_v63, %v281_v46 }
 0x393   :  { %v324_v1 = vmul.f32 %v415_v54, %v317_v0  ;;  %v325_v3 = vmul.f32 %v417_v55, %v321_v2 }
 0x395   :  { %329 = vperm.xlu0 %404, %v324_v1  }
 0x399   :  { %332 = vperm.xlu0 %404, %v325_v3  }
 0x414   :  { %v330_v4 = vpop.permute.xlu0 %329 }
 0x415   :  { %v337_v6 = vrot.slane %v330_v4, %v261_v39 }
 0x418   :  { %v333_v5 = vpop.permute.xlu0 %332 }
 0x419   :  { %v341_v7 = vrot.slane %v333_v5, %v261_v39 }
 0x41b   :  { %v342_v8 = vsel %vm267_vm2, %v341_v7, %v337_v6 }
 0x41c   :  { %344 = vst.msk [vmem:[#allocation10] sm:$0x3] %vm270_vm3, %v342_v8 }
 0x41d   :  { %519 = shalt.err (!%p516_p8)
}
 0x41e   :  { %s520_s20 = scalar_lea.hbm %s678_s5, 32 }
 0x41f   :  { %p521_p9 = scmp.ne.s32.totalorder %s678_s5, %s520_s20  ;;  %p524_p10 = scmp.lt.u32.totalorder %s520_s20, %s678_s5 }
 0x421   :  { %p526_p11 = pnand %p524_p10, %p521_p9 }
 0x423   :  { %529 = shalt.err (!%p526_p11)
}
 0x424   :  { %354 = dma.vmem_to_hbm [thread:$0]  %s352_s29, 32, %s678_s5, [#allocation4]  }
 0x425   :  { %536 = dma.done.wait [#allocation4], 32  }
 0x426   :  { %537 = vsyncadd [#allocation4], 4294967264 }
 0x427   :  { %358 = vsyncpa [#allocation3], 1 }
 0x428   :  { %359 = vsyncpa [#allocation6], 1 }
 0x429   :  { %360 = vsyncpa [#allocation9], 1 }
 0x42a   :  { %361 = vsyncpa [#allocation4], 1 }

</bundles_post_ra>
